<compile_context>
chip_gen: v7x
topology: tpu7x:2x2x1
jax: 0.10.0
libtpu: 0.0.40
codegen_flags: <defaults>
</compile_context>

<pallas_src>
import math

import jax
import jax.numpy as jnp
from jax.experimental import pallas as pl
from jax.experimental.pallas import tpu as pltpu

# ---- problem sizes (small, consistent with the module) ---------------------
B = 2          # batch
S = 8          # sequence length
D_MODEL = 32   # d_model
H = 4          # heads
D_K = D_MODEL // H
DROPOUT = 0.0


def mha_kernel(x_ref, bias_ref, wqkv_ref, bqkv_ref, wo_ref, bo_ref, out_ref):
    """Whole batch in one invocation: fused QKV projection + per-head attention
    over the flattened batch + output projection accumulated per head."""
    scale = 1.0 / math.sqrt(D_K)

    # Fused QKV projection: (B*S, 3D) = bf16 @ bf16(block-diag) -> f32 acc, +bias f32.
    qkv = jnp.dot(x_ref[...], wqkv_ref[...],
                  preferred_element_type=jnp.float32) + bqkv_ref[...]
    Qb = (qkv[:, 0:D_MODEL] * scale).astype(jnp.bfloat16)   # scale folded into Q once
    Kb = qkv[:, D_MODEL:2 * D_MODEL].astype(jnp.bfloat16)
    Vb = qkv[:, 2 * D_MODEL:3 * D_MODEL].astype(jnp.bfloat16)

    bias = bias_ref[...]                                     # (B*S, B*S) f32 additive bias

    # Per-head attention over the whole flattened batch; accumulate the output
    # projection as a sum of per-head partials in f32 registers (no ctx scratch).
    acc = jnp.zeros((B * S, D_MODEL), jnp.float32)
    for h_i in range(H):
        cols = slice(h_i * D_K, (h_i + 1) * D_K)             # hoisted lane slices
        Qh, Kh, Vh = Qb[:, cols], Kb[:, cols], Vb[:, cols]   # (B*S, D_K) bf16

        # scores = (Q/sqrt(d_k)) @ K^T + mask bias (cross-batch key blocks = -1e9)
        scores = jax.lax.dot_general(
            Qh, Kh, dimension_numbers=(((1,), (1,)), ((), ())),
            preferred_element_type=jnp.float32) + bias        # (B*S, B*S) f32

        # numerically stable softmax over the last axis (f32 VPU/EUP math)
        scores = scores - jnp.max(scores, axis=-1, keepdims=True)
        p = jnp.exp(scores)
        p = p * pl.reciprocal(jnp.sum(p, axis=-1, keepdims=True), approx=True)

        ctx_h = jnp.dot(p.astype(jnp.bfloat16), Vh,
                        preferred_element_type=jnp.float32)   # (B*S, D_K) f32

        # partial output projection for this head: ctx_h @ Wo[h] -> (B*S, D_MODEL)
        acc = acc + jnp.dot(ctx_h.astype(jnp.bfloat16), wo_ref[h_i],
                            preferred_element_type=jnp.float32)

    out_ref[...] = (acc + bo_ref[...]).astype(out_ref.dtype)


def multi_head_attention(q, k, v, mask, params):
    """Parameter / layout plumbing (pure XLA) + a single pallas_call."""
    wq, bq, wk, bk, wv, bv, wo, bo = params

    # Fused QKV weight (block-diagonal) and bias; bf16 weights for the MXU.
    zeros = jnp.zeros((D_MODEL, D_MODEL), jnp.float32)
    w_qkv = jnp.block([[wq.T, zeros, zeros],
                       [zeros, wk.T, zeros],
                       [zeros, zeros, wv.T]]).astype(jnp.bfloat16)      # (3D, 3D)
    b_qkv = jnp.concatenate([bq, bk, bv]).reshape(1, 3 * D_MODEL)       # (1, 3D) f32

    # Output projection split per head: ctx @ wo.T == sum_h ctx_h @ wo_hd[h].
    wo_hd = wo.T.reshape(H, D_K, D_MODEL).astype(jnp.bfloat16)          # (H, D_K, D)
    bo2 = bo.reshape(1, D_MODEL)

    # Flatten the batch and concatenate q/k/v along features -> one matmul operand.
    x_cat = jnp.concatenate(
        [q.reshape(B * S, D_MODEL), k.reshape(B * S, D_MODEL),
         v.reshape(B * S, D_MODEL)], axis=-1).astype(jnp.bfloat16)      # (B*S, 3D)

    # mask -> additive bias ONCE, with cross-batch key blocks fully masked so the
    # kernel can attend over the whole flattened batch in one dot per head.
    bias_b = jnp.where(mask == 0, -1.0e9, 0.0).astype(jnp.float32)      # (B, S, S)
    same_batch = jnp.arange(B)[:, None] == jnp.arange(B)[None, :]       # (B, B)
    bias_full = jnp.where(same_batch[:, None, :, None],
                          bias_b[:, :, None, :],
                          jnp.float32(-1.0e9)).reshape(B * S, B * S)    # (B*S, B*S)

    vmem = pl.BlockSpec(memory_space=pltpu.MemorySpace.VMEM)
    out_flat = pl.pallas_call(
        mha_kernel,
        out_shape=jax.ShapeDtypeStruct((B * S, D_MODEL), jnp.float32),
        in_specs=[vmem] * 6,
        out_specs=vmem,
    )(x_cat, bias_full, w_qkv, b_qkv, wo_hd, bo2)
    return out_flat.reshape(B, S, D_MODEL)


# ---- pure-JAX f32 reference (for a correctness sanity check) ----------------
def ref_mha(q, k, v, mask, params):
    wq, bq, wk, bk, wv, bv, wo, bo = params
    Q = q @ wq.T + bq
    K = k @ wk.T + bk
    V = v @ wv.T + bv
    Qh = Q.reshape(B, S, H, D_K).transpose(0, 2, 1, 3)
    Kh = K.reshape(B, S, H, D_K).transpose(0, 2, 1, 3)
    Vh = V.reshape(B, S, H, D_K).transpose(0, 2, 1, 3)
    scores = jnp.einsum('bhqd,bhkd->bhqk', Qh, Kh) / math.sqrt(D_K)
    scores = jnp.where(mask[:, None] == 0, -1.0e9, scores)
    p = jax.nn.softmax(scores, axis=-1)
    ctx = jnp.einsum('bhqk,bhkd->bhqd', p, Vh)
    ctx = ctx.transpose(0, 2, 1, 3).reshape(B, S, D_MODEL)
    return ctx @ wo.T + bo


if __name__ == "__main__":
    key = jax.random.PRNGKey(0)
    keys = jax.random.split(key, 12)

    def init_w(k):
        return jax.random.normal(k, (D_MODEL, D_MODEL), jnp.float32) * 0.05

    def init_b(k):
        return jax.random.normal(k, (D_MODEL,), jnp.float32) * 0.05

    params = (init_w(keys[0]), init_b(keys[1]),   # w_q, b_q
              init_w(keys[2]), init_b(keys[3]),   # w_k, b_k
              init_w(keys[4]), init_b(keys[5]),   # w_v, b_v
              init_w(keys[6]), init_b(keys[7]))   # w_o, b_o

    q = jax.random.normal(keys[8], (B, S, D_MODEL), jnp.float32)
    k = jax.random.normal(keys[9], (B, S, D_MODEL), jnp.float32)
    v = jax.random.normal(keys[10], (B, S, D_MODEL), jnp.float32)
    # causal mask, broadcast over heads (0 -> masked with -1e9)
    mask = jnp.broadcast_to(jnp.tril(jnp.ones((S, S), jnp.float32)), (B, S, S))

    out = multi_head_attention(q, k, v, mask, params)
    jax.block_until_ready(out)

    ref_out = ref_mha(q, k, v, mask, params)
    # bf16 MXU operands (f32 accumulation) + approx reciprocal -> looser tolerance.
    assert jnp.allclose(out, ref_out, atol=2e-2, rtol=2e-2), "output mismatch"

    print("KERNEL_OK")
</pallas_src>

<mosaic_0001>
module attributes {stable_mosaic.version = 11 : i64} {
  func.func @mha_kernel(%arg0: memref<16x96xbf16, #tpu.memory_space<vmem>>, %arg1: memref<16x16xf32, #tpu.memory_space<vmem>>, %arg2: memref<96x96xbf16, #tpu.memory_space<vmem>>, %arg3: memref<1x96xf32, #tpu.memory_space<vmem>>, %arg4: memref<4x8x32xbf16, #tpu.memory_space<vmem>>, %arg5: memref<1x32xf32, #tpu.memory_space<vmem>>, %arg6: memref<16x32xf32, #tpu.memory_space<vmem>>) attributes {dimension_semantics = [], scalar_prefetch = 0 : i64, scratch_operands = 0 : i64, tpu.core_type = #tpu.core_type<tc>} {
    %c0 = arith.constant 0 : index
    %c0_0 = arith.constant 0 : index
    %0 = vector.load %arg0[%c0, %c0_0] : memref<16x96xbf16, #tpu.memory_space<vmem>>, vector<16x96xbf16>
    %c0_1 = arith.constant 0 : index
    %c0_2 = arith.constant 0 : index
    %1 = vector.load %arg2[%c0_1, %c0_2] : memref<96x96xbf16, #tpu.memory_space<vmem>>, vector<96x96xbf16>
    %cst = arith.constant dense<0.000000e+00> : vector<16x96xf32>
    %2 = tpu.matmul %0, %1, %cst {dimension_numbers = #tpu.dot_dimension_numbers<[1], [0], [0], [1], [0, 0, 1, 1], [], []>} : vector<16x96xbf16>, vector<96x96xbf16>, vector<16x96xf32> -> vector<16x96xf32>
    %c0_3 = arith.constant 0 : index
    %c0_4 = arith.constant 0 : index
    %3 = vector.load %arg3[%c0_3, %c0_4] : memref<1x96xf32, #tpu.memory_space<vmem>>, vector<1x96xf32>
    %4 = vector.broadcast %3 : vector<1x96xf32> to vector<16x96xf32>
    %5 = arith.addf %2, %4 : vector<16x96xf32>
    %6 = vector.extract_strided_slice %5 {offsets = [0, 0], sizes = [16, 32], strides = [1, 1]} : vector<16x96xf32> to vector<16x32xf32>
    %cst_5 = arith.constant 0.353553385 : f32
    %7 = vector.broadcast %cst_5 : f32 to vector<16x32xf32>
    %8 = arith.mulf %6, %7 : vector<16x32xf32>
    %9 = arith.truncf %8 : vector<16x32xf32> to vector<16x32xbf16>
    %10 = vector.extract_strided_slice %5 {offsets = [0, 32], sizes = [16, 32], strides = [1, 1]} : vector<16x96xf32> to vector<16x32xf32>
    %11 = arith.truncf %10 : vector<16x32xf32> to vector<16x32xbf16>
    %12 = vector.extract_strided_slice %5 {offsets = [0, 64], sizes = [16, 32], strides = [1, 1]} : vector<16x96xf32> to vector<16x32xf32>
    %13 = arith.truncf %12 : vector<16x32xf32> to vector<16x32xbf16>
    %c0_6 = arith.constant 0 : index
    %c0_7 = arith.constant 0 : index
    %14 = vector.load %arg1[%c0_6, %c0_7] : memref<16x16xf32, #tpu.memory_space<vmem>>, vector<16x16xf32>
    %cst_8 = arith.constant 0.000000e+00 : f32
    %15 = vector.broadcast %cst_8 : f32 to vector<16x32xf32>
    %16 = vector.extract_strided_slice %9 {offsets = [0, 0], sizes = [16, 8], strides = [1, 1]} : vector<16x32xbf16> to vector<16x8xbf16>
    %17 = vector.extract_strided_slice %11 {offsets = [0, 0], sizes = [16, 8], strides = [1, 1]} : vector<16x32xbf16> to vector<16x8xbf16>
    %18 = vector.extract_strided_slice %13 {offsets = [0, 0], sizes = [16, 8], strides = [1, 1]} : vector<16x32xbf16> to vector<16x8xbf16>
    %cst_9 = arith.constant dense<0.000000e+00> : vector<16x16xf32>
    %19 = tpu.matmul %16, %17, %cst_9 {dimension_numbers = #tpu.dot_dimension_numbers<[1], [1], [0], [0], [0, 0, 1, 0], [], []>} : vector<16x8xbf16>, vector<16x8xbf16>, vector<16x16xf32> -> vector<16x16xf32>
    %20 = arith.addf %19, %14 : vector<16x16xf32>
    %cst_10 = arith.constant dense<0xFF800000> : vector<16xf32>
    %21 = vector.multi_reduction <maximumf>, %20, %cst_10 [1] : vector<16x16xf32> to vector<16xf32>
    %22 = vector.shape_cast %21 : vector<16xf32> to vector<16x1xf32>
    %23 = vector.broadcast %22 : vector<16x1xf32> to vector<16x16xf32>
    %24 = arith.subf %20, %23 : vector<16x16xf32>
    %25 = math.exp %24 : vector<16x16xf32>
    %cst_11 = arith.constant dense<0.000000e+00> : vector<16xf32>
    %26 = vector.multi_reduction <add>, %25, %cst_11 [1] : vector<16x16xf32> to vector<16xf32>
    %27 = vector.shape_cast %26 : vector<16xf32> to vector<16x1xf32>
    %28 = tpu.reciprocal %27 {approx = true} : vector<16x1xf32> -> vector<16x1xf32>
    %29 = vector.broadcast %28 : vector<16x1xf32> to vector<16x16xf32>
    %30 = arith.mulf %25, %29 : vector<16x16xf32>
    %31 = arith.truncf %30 : vector<16x16xf32> to vector<16x16xbf16>
    %cst_12 = arith.constant dense<0.000000e+00> : vector<16x8xf32>
    %32 = tpu.matmul %31, %18, %cst_12 {dimension_numbers = #tpu.dot_dimension_numbers<[1], [0], [0], [1], [0, 0, 1, 1], [], []>} : vector<16x16xbf16>, vector<16x8xbf16>, vector<16x8xf32> -> vector<16x8xf32>
    %33 = arith.truncf %32 : vector<16x8xf32> to vector<16x8xbf16>
    %c0_13 = arith.constant 0 : index
    %c0_14 = arith.constant 0 : index
    %c0_15 = arith.constant 0 : index
    %34 = vector.load %arg4[%c0_13, %c0_14, %c0_15] : memref<4x8x32xbf16, #tpu.memory_space<vmem>>, vector<1x8x32xbf16>
    %35 = vector.shape_cast %34 : vector<1x8x32xbf16> to vector<8x32xbf16>
    %cst_16 = arith.constant dense<0.000000e+00> : vector<16x32xf32>
    %36 = tpu.matmul %33, %35, %cst_16 {dimension_numbers = #tpu.dot_dimension_numbers<[1], [0], [0], [1], [0, 0, 1, 1], [], []>} : vector<16x8xbf16>, vector<8x32xbf16>, vector<16x32xf32> -> vector<16x32xf32>
    %37 = arith.addf %15, %36 : vector<16x32xf32>
    %38 = vector.extract_strided_slice %9 {offsets = [0, 8], sizes = [16, 8], strides = [1, 1]} : vector<16x32xbf16> to vector<16x8xbf16>
    %39 = vector.extract_strided_slice %11 {offsets = [0, 8], sizes = [16, 8], strides = [1, 1]} : vector<16x32xbf16> to vector<16x8xbf16>
    %40 = vector.extract_strided_slice %13 {offsets = [0, 8], sizes = [16, 8], strides = [1, 1]} : vector<16x32xbf16> to vector<16x8xbf16>
    %cst_17 = arith.constant dense<0.000000e+00> : vector<16x16xf32>
    %41 = tpu.matmul %38, %39, %cst_17 {dimension_numbers = #tpu.dot_dimension_numbers<[1], [1], [0], [0], [0, 0, 1, 0], [], []>} : vector<16x8xbf16>, vector<16x8xbf16>, vector<16x16xf32> -> vector<16x16xf32>
    %42 = arith.addf %41, %14 : vector<16x16xf32>
    %cst_18 = arith.constant dense<0xFF800000> : vector<16xf32>
    %43 = vector.multi_reduction <maximumf>, %42, %cst_18 [1] : vector<16x16xf32> to vector<16xf32>
    %44 = vector.shape_cast %43 : vector<16xf32> to vector<16x1xf32>
    %45 = vector.broadcast %44 : vector<16x1xf32> to vector<16x16xf32>
    %46 = arith.subf %42, %45 : vector<16x16xf32>
    %47 = math.exp %46 : vector<16x16xf32>
    %cst_19 = arith.constant dense<0.000000e+00> : vector<16xf32>
    %48 = vector.multi_reduction <add>, %47, %cst_19 [1] : vector<16x16xf32> to vector<16xf32>
    %49 = vector.shape_cast %48 : vector<16xf32> to vector<16x1xf32>
    %50 = tpu.reciprocal %49 {approx = true} : vector<16x1xf32> -> vector<16x1xf32>
    %51 = vector.broadcast %50 : vector<16x1xf32> to vector<16x16xf32>
    %52 = arith.mulf %47, %51 : vector<16x16xf32>
    %53 = arith.truncf %52 : vector<16x16xf32> to vector<16x16xbf16>
    %cst_20 = arith.constant dense<0.000000e+00> : vector<16x8xf32>
    %54 = tpu.matmul %53, %40, %cst_20 {dimension_numbers = #tpu.dot_dimension_numbers<[1], [0], [0], [1], [0, 0, 1, 1], [], []>} : vector<16x16xbf16>, vector<16x8xbf16>, vector<16x8xf32> -> vector<16x8xf32>
    %55 = arith.truncf %54 : vector<16x8xf32> to vector<16x8xbf16>
    %c1 = arith.constant 1 : index
    %c0_21 = arith.constant 0 : index
    %c0_22 = arith.constant 0 : index
    %56 = vector.load %arg4[%c1, %c0_21, %c0_22] : memref<4x8x32xbf16, #tpu.memory_space<vmem>>, vector<1x8x32xbf16>
    %57 = vector.shape_cast %56 : vector<1x8x32xbf16> to vector<8x32xbf16>
    %cst_23 = arith.constant dense<0.000000e+00> : vector<16x32xf32>
    %58 = tpu.matmul %55, %57, %cst_23 {dimension_numbers = #tpu.dot_dimension_numbers<[1], [0], [0], [1], [0, 0, 1, 1], [], []>} : vector<16x8xbf16>, vector<8x32xbf16>, vector<16x32xf32> -> vector<16x32xf32>
    %59 = arith.addf %37, %58 : vector<16x32xf32>
    %60 = vector.extract_strided_slice %9 {offsets = [0, 16], sizes = [16, 8], strides = [1, 1]} : vector<16x32xbf16> to vector<16x8xbf16>
    %61 = vector.extract_strided_slice %11 {offsets = [0, 16], sizes = [16, 8], strides = [1, 1]} : vector<16x32xbf16> to vector<16x8xbf16>
    %62 = vector.extract_strided_slice %13 {offsets = [0, 16], sizes = [16, 8], strides = [1, 1]} : vector<16x32xbf16> to vector<16x8xbf16>
    %cst_24 = arith.constant dense<0.000000e+00> : vector<16x16xf32>
    %63 = tpu.matmul %60, %61, %cst_24 {dimension_numbers = #tpu.dot_dimension_numbers<[1], [1], [0], [0], [0, 0, 1, 0], [], []>} : vector<16x8xbf16>, vector<16x8xbf16>, vector<16x16xf32> -> vector<16x16xf32>
    %64 = arith.addf %63, %14 : vector<16x16xf32>
    %cst_25 = arith.constant dense<0xFF800000> : vector<16xf32>
    %65 = vector.multi_reduction <maximumf>, %64, %cst_25 [1] : vector<16x16xf32> to vector<16xf32>
    %66 = vector.shape_cast %65 : vector<16xf32> to vector<16x1xf32>
    %67 = vector.broadcast %66 : vector<16x1xf32> to vector<16x16xf32>
    %68 = arith.subf %64, %67 : vector<16x16xf32>
    %69 = math.exp %68 : vector<16x16xf32>
    %cst_26 = arith.constant dense<0.000000e+00> : vector<16xf32>
    %70 = vector.multi_reduction <add>, %69, %cst_26 [1] : vector<16x16xf32> to vector<16xf32>
    %71 = vector.shape_cast %70 : vector<16xf32> to vector<16x1xf32>
    %72 = tpu.reciprocal %71 {approx = true} : vector<16x1xf32> -> vector<16x1xf32>
    %73 = vector.broadcast %72 : vector<16x1xf32> to vector<16x16xf32>
    %74 = arith.mulf %69, %73 : vector<16x16xf32>
    %75 = arith.truncf %74 : vector<16x16xf32> to vector<16x16xbf16>
    %cst_27 = arith.constant dense<0.000000e+00> : vector<16x8xf32>
    %76 = tpu.matmul %75, %62, %cst_27 {dimension_numbers = #tpu.dot_dimension_numbers<[1], [0], [0], [1], [0, 0, 1, 1], [], []>} : vector<16x16xbf16>, vector<16x8xbf16>, vector<16x8xf32> -> vector<16x8xf32>
    %77 = arith.truncf %76 : vector<16x8xf32> to vector<16x8xbf16>
    %c2 = arith.constant 2 : index
    %c0_28 = arith.constant 0 : index
    %c0_29 = arith.constant 0 : index
    %78 = vector.load %arg4[%c2, %c0_28, %c0_29] : memref<4x8x32xbf16, #tpu.memory_space<vmem>>, vector<1x8x32xbf16>
    %79 = vector.shape_cast %78 : vector<1x8x32xbf16> to vector<8x32xbf16>
    %cst_30 = arith.constant dense<0.000000e+00> : vector<16x32xf32>
    %80 = tpu.matmul %77, %79, %cst_30 {dimension_numbers = #tpu.dot_dimension_numbers<[1], [0], [0], [1], [0, 0, 1, 1], [], []>} : vector<16x8xbf16>, vector<8x32xbf16>, vector<16x32xf32> -> vector<16x32xf32>
    %81 = arith.addf %59, %80 : vector<16x32xf32>
    %82 = vector.extract_strided_slice %9 {offsets = [0, 24], sizes = [16, 8], strides = [1, 1]} : vector<16x32xbf16> to vector<16x8xbf16>
    %83 = vector.extract_strided_slice %11 {offsets = [0, 24], sizes = [16, 8], strides = [1, 1]} : vector<16x32xbf16> to vector<16x8xbf16>
    %84 = vector.extract_strided_slice %13 {offsets = [0, 24], sizes = [16, 8], strides = [1, 1]} : vector<16x32xbf16> to vector<16x8xbf16>
    %cst_31 = arith.constant dense<0.000000e+00> : vector<16x16xf32>
    %85 = tpu.matmul %82, %83, %cst_31 {dimension_numbers = #tpu.dot_dimension_numbers<[1], [1], [0], [0], [0, 0, 1, 0], [], []>} : vector<16x8xbf16>, vector<16x8xbf16>, vector<16x16xf32> -> vector<16x16xf32>
    %86 = arith.addf %85, %14 : vector<16x16xf32>
    %cst_32 = arith.constant dense<0xFF800000> : vector<16xf32>
    %87 = vector.multi_reduction <maximumf>, %86, %cst_32 [1] : vector<16x16xf32> to vector<16xf32>
    %88 = vector.shape_cast %87 : vector<16xf32> to vector<16x1xf32>
    %89 = vector.broadcast %88 : vector<16x1xf32> to vector<16x16xf32>
    %90 = arith.subf %86, %89 : vector<16x16xf32>
    %91 = math.exp %90 : vector<16x16xf32>
    %cst_33 = arith.constant dense<0.000000e+00> : vector<16xf32>
    %92 = vector.multi_reduction <add>, %91, %cst_33 [1] : vector<16x16xf32> to vector<16xf32>
    %93 = vector.shape_cast %92 : vector<16xf32> to vector<16x1xf32>
    %94 = tpu.reciprocal %93 {approx = true} : vector<16x1xf32> -> vector<16x1xf32>
    %95 = vector.broadcast %94 : vector<16x1xf32> to vector<16x16xf32>
    %96 = arith.mulf %91, %95 : vector<16x16xf32>
    %97 = arith.truncf %96 : vector<16x16xf32> to vector<16x16xbf16>
    %cst_34 = arith.constant dense<0.000000e+00> : vector<16x8xf32>
    %98 = tpu.matmul %97, %84, %cst_34 {dimension_numbers = #tpu.dot_dimension_numbers<[1], [0], [0], [1], [0, 0, 1, 1], [], []>} : vector<16x16xbf16>, vector<16x8xbf16>, vector<16x8xf32> -> vector<16x8xf32>
    %99 = arith.truncf %98 : vector<16x8xf32> to vector<16x8xbf16>
    %c3 = arith.constant 3 : index
    %c0_35 = arith.constant 0 : index
    %c0_36 = arith.constant 0 : index
    %100 = vector.load %arg4[%c3, %c0_35, %c0_36] : memref<4x8x32xbf16, #tpu.memory_space<vmem>>, vector<1x8x32xbf16>
    %101 = vector.shape_cast %100 : vector<1x8x32xbf16> to vector<8x32xbf16>
    %cst_37 = arith.constant dense<0.000000e+00> : vector<16x32xf32>
    %102 = tpu.matmul %99, %101, %cst_37 {dimension_numbers = #tpu.dot_dimension_numbers<[1], [0], [0], [1], [0, 0, 1, 1], [], []>} : vector<16x8xbf16>, vector<8x32xbf16>, vector<16x32xf32> -> vector<16x32xf32>
    %103 = arith.addf %81, %102 : vector<16x32xf32>
    %c0_38 = arith.constant 0 : index
    %c0_39 = arith.constant 0 : index
    %104 = vector.load %arg5[%c0_38, %c0_39] : memref<1x32xf32, #tpu.memory_space<vmem>>, vector<1x32xf32>
    %105 = vector.broadcast %104 : vector<1x32xf32> to vector<16x32xf32>
    %106 = arith.addf %103, %105 : vector<16x32xf32>
    %c0_40 = arith.constant 0 : index
    %c0_41 = arith.constant 0 : index
    %107 = vector.load %arg6[%c0_40, %c0_41] : memref<16x32xf32, #tpu.memory_space<vmem>>, vector<16x32xf32>
    tpu.vector_store %arg6[%c0_40, %c0_41], %106 {strides = array<i32>} : memref<16x32xf32, #tpu.memory_space<vmem>>, vector<16x32xf32>,
    return
  }
}

</mosaic_0001>

<bundles_post_ra>
// kernel: tpu_custom_call.1
= control target key start
LH: loop header
LB: loop body
LE: loop exit
PB: predicated region body
PF: predicated region fallthrough
CT: control target
= control target key end

     0   :  { %11 = vsyncpa [#allocation3], 0  ;;  %s1492_s0 = inlined_call_operand.hbm [shape: bf16[16,96], index: 0, kind: input, shape index: {}]   ;;  %s1493_s1 = inlined_call_operand.hbm [shape: f32[16,16], index: 1, kind: input, shape index: {}]   ;;  %s1494_s2 = inlined_call_operand.hbm [shape: bf16[96,96], index: 2, kind: input, shape index: {}]   ;;  %s1495_s3 = inlined_call_operand.vmem [shape: f32[1,96], index: 3, kind: input, shape index: {}]   ;;  %s1496_s4 = inlined_call_operand.hbm [shape: bf16[4,8,32], index: 4, kind: input, shape index: {}]   ;;  %s1497_s5 = inlined_call_operand.vmem [shape: f32[1,32], index: 5, kind: input, shape index: {}]   ;;  %s1498_s6 = inlined_call_operand.hbm [shape: f32[16,32], index: 6, kind: output, shape index: {}]  }
   0x1   :  { %12 = vsyncpa [#allocation6], 0 }
   0x2   :  { %13 = vsyncpa [#allocation9], 0 }
   0x3   :  { %14 = vsyncpa [#allocation4], 0  ;;  %s1233_s21 = smov [#allocation5]   ;;  %s1115_s25 = scalar_lea.hbm %s1493_s1, 256 }
   0x4   :  { %s32_s22 = sshll.u32 %s1233_s21, 4  ;;  %p1116_p0 = scmp.ne.s32.totalorder %s1493_s1, %s1115_s25  ;;  %s33_s22 = int_to_ptr.vmem [resolvable:$true] %s32_s22 }
   0x5   :  { %p1119_p1 = scmp.lt.u32.totalorder %s1115_s25, %s1493_s1 }
   0x7   :  { %p1121_p2 = pnand %p1119_p1, %p1116_p0 }
   0x9   :  { %1124 = shalt.err (!%p1121_p2)
}
   0xa   :  { %s1125_s30 = scalar_lea.vmem %s33_s22, 256  ;;  %p1130_p4 = scmp.lt.s32.totalorder %s33_s22, %s33_s22 }
   0xb   :  { %p1126_p3 = scmp.ne.s32.totalorder %s33_s22, %s1125_s30  ;;  %p1131_p5 = scmp.lt.s32.totalorder %s1125_s30, %s1125_s30 }
   0xd   :  { %p1132_p6 = por %p1131_p5, %p1130_p4 }
   0xf   :  { %p1133_p7 = pnand %p1132_p6, %p1126_p3 }
  0x11   :  { %1136 = shalt.err (!%p1133_p7)
}
  0x12   :  { %s1234_s7 = smov 128   ;;  %s1235_s8 = smov 8  }
  0x13   :  { %38 = dma.hbm_to_vmem [thread:$0]  %s1493_s1, 256, %s33_s22, [#allocation6], %s1234_s7, %s1234_s7, %s1235_s8  }
  0x14   :  { %s1236_s11 = smov [#allocation2]   ;;  %s1137_s15 = scalar_lea.hbm %s1492_s0, 128 }
  0x15   :  { %s20_s12 = sshll.u32 %s1236_s11, 4  ;;  %p1138_p8 = scmp.ne.s32.totalorder %s1492_s0, %s1137_s15  ;;  %s21_s12 = int_to_ptr.vmem [resolvable:$true] %s20_s12 }
  0x16   :  { %p1141_p9 = scmp.lt.u32.totalorder %s1137_s15, %s1492_s0 }
  0x18   :  { %p1143_p10 = pnand %p1141_p9, %p1138_p8 }
  0x1a   :  { %1146 = shalt.err (!%p1143_p10)
}
  0x1b   :  { %s1147_s20 = scalar_lea.vmem %s21_s12, 128  ;;  %p1152_p12 = scmp.lt.s32.totalorder %s21_s12, %s21_s12 }
  0x1c   :  { %p1148_p11 = scmp.ne.s32.totalorder %s21_s12, %s1147_s20  ;;  %p1153_p13 = scmp.lt.s32.totalorder %s1147_s20, %s1147_s20 }
  0x1e   :  { %p1154_p0 = por %p1153_p13, %p1152_p12 }
  0x20   :  { %p1155_p1 = pnand %p1154_p0, %p1148_p11 }
  0x22   :  { %1158 = shalt.err (!%p1155_p1)
}
  0x23   :  { %s1237_s1 = smov 64   ;;  %s1238_s21 = smov 4  }
  0x24   :  { %26 = dma.hbm_to_vmem [thread:$0]  %s1492_s0, 128, %s21_s12, [#allocation3], %s1237_s1, %s1237_s1, %s1238_s21  }
  0x25   :  { %s1239_s24 = smov [#allocation7]   ;;  %s1240_s26 = smov [#allocation8]  }
  0x26   :  { %s44_s25 = sshll.u32 %s1239_s24, 4  ;;  %s58_s27 = sshll.u32 %s1240_s26, 4  ;;  %s45_s25 = int_to_ptr.vmem [resolvable:$true] %s44_s25  ;;  %s1319_s27 = int_to_ptr.vmem [resolvable:$true] %s58_s27 }
  0x27   :  { %s1159_s30 = scalar_lea.hbm %s1494_s2, 768 }
  0x28   :  { %p1160_p2 = scmp.ne.s32.totalorder %s1494_s2, %s1159_s30  ;;  %p1163_p3 = scmp.lt.u32.totalorder %s1159_s30, %s1494_s2 }
  0x2a   :  { %p1165_p4 = pnand %p1163_p3, %p1160_p2 }
  0x2c   :  { %1168 = shalt.err (!%p1165_p4)
}
  0x2d   :  { %s1169_s0 = scalar_lea.vmem %s45_s25, 768  ;;  %p1174_p6 = scmp.lt.s32.totalorder %s45_s25, %s45_s25 }
  0x2e   :  { %p1170_p5 = scmp.ne.s32.totalorder %s45_s25, %s1169_s0  ;;  %p1175_p7 = scmp.lt.s32.totalorder %s1169_s0, %s1169_s0 }
  0x30   :  { %p1176_p8 = por %p1175_p7, %p1174_p6 }
  0x32   :  { %p1177_p9 = pnand %p1176_p8, %p1170_p5 }
  0x34   :  { %1180 = shalt.err (!%p1177_p9)
}
  0x35   :  { %50 = dma.hbm_to_vmem [thread:$0]  %s1494_s2, 768, %s45_s25, [#allocation6], %s1237_s1, %s1237_s1, %s1238_s21  }
  0x36   :  { %s1181_s17 = scalar_lea.hbm %s1496_s4, 256 }
  0x37   :  { %p1182_p10 = scmp.ne.s32.totalorder %s1496_s4, %s1181_s17  ;;  %p1185_p11 = scmp.lt.u32.totalorder %s1181_s17, %s1496_s4 }
  0x39   :  { %p1187_p12 = pnand %p1185_p11, %p1182_p10 }
  0x3b   :  { %1190 = shalt.err (!%p1187_p12)
}
  0x3c   :  { %s1191_s23 = scalar_lea.vmem %s1319_s27, 256  ;;  %p1196_p0 = scmp.lt.s32.totalorder %s1319_s27, %s1319_s27 }
  0x3d   :  { %p1192_p13 = scmp.ne.s32.totalorder %s1319_s27, %s1191_s23  ;;  %p1197_p1 = scmp.lt.s32.totalorder %s1191_s23, %s1191_s23 }
  0x3f   :  { %p1198_p2 = por %p1197_p1, %p1196_p0 }
  0x41   :  { %p1199_p3 = pnand %p1198_p2, %p1192_p13 }
  0x43   :  { %1202 = shalt.err (!%p1199_p3)
}
  0x44   :  { %64 = dma.hbm_to_vmem [thread:$0]  %s1496_s4, 256, %s1319_s27, [#allocation9], %s1237_s1, %s1237_s1, %s1238_s21  }
  0x45   :  { %1225 = dma.done.wait [#allocation3], 128  }
  0x46   :  { %1226 = vsyncadd [#allocation3], 4294967168 }
  0x47   :  { %1227 = dma.done.wait [#allocation6], 1024  }
  0x48   :  { %1228 = vsyncadd [#allocation6], 4294966272 }
  0x49   :  { %1229 = dma.done.wait [#allocation9], 256  }
  0x4a   :  { %1230 = vsyncadd [#allocation9], 4294967040  ;;  %v1241_v0 = vmov 0.0   ;;  %vm1242_vm0 = vmmov 0   ;;  %v1076_v1 = vld [vmem:[#allocation7] sm:$0xff]   ;;  %v1077_v2 = vld [vmem:[#allocation7 + $0x8] sm:$0xff]  }
  0x4b   :  { %967 = vmatprep.subr.bf16.mxu0 %v1241_v0  ;;  %979 = vmatprep.mubr.msk.bf16.mxu0 %vm1242_vm0, %v1241_v0  ;;  %v1078_v3 = vld [vmem:[#allocation7 + $0x10] sm:$0xff]   ;;  %v1079_v4 = vld [vmem:[#allocation7 + $0x18] sm:$0xff]   ;;  %v1080_v5 = vld [vmem:[#allocation7 + $0x20] sm:$0xff]   ;;  %vm142_vm1 = vcmask 785408   ;;  %s1243_s25 = smov 96   ;;  %vm196_vm2 = vcmask 64512  }
  0x4c   :  { %983 = vmatprep.subr.bf16.mxu1 %v1241_v0  ;;  %985 = vmatprep.mubr.msk.bf16.mxu1 %vm1242_vm0, %v1241_v0  ;;  %v1081_v6 = vld [vmem:[#allocation7 + $0x28] sm:$0xff]   ;;  %v1384_v21 = vld [vmem:[#allocation5] sm:$0xff]  ;;  %v1386_v23 = vld [vmem:[#allocation5 + $0x8] sm:$0xff]  ;;  %vm244_vm3 = vcmask 130048   ;;  %s1246_s26 = smov 56   ;;  %s1247_s27 = smov 80  }
  0x4d   :  { %968 = vmatpush3.bf16.msra.mxu0 %v1076_v1  ;;  %v1082_v7 = vld [vmem:[#allocation2] sm:$0xff]   ;;  %s1248_s28 = smov 112   ;;  %vm445_vm4 = vcmask 1043456   ;;  %s1249_s29 = smov 48   ;;  %vm892_vm5 = vcmask 261120  }
  0x4e   :  { %969 = vmatprep.subr.bf16.mxu0 %v1241_v0  ;;  %v914_v8 = vld [vmem:[%s1495_s3] ss:$0 sm:$0xff]  ;;  %s1244_s3 = smov 88   ;;  %s1250_s30 = smov 72  }
  0x4f   :  { %s1251_s9 = smov 104   ;;  %s1252_s10 = smov 40  }
  0x50   :  { %s1253_s0 = smov [#allocation10]  }
  0x51   :  { %970 = vmatpush3.bf16.msra.mxu0 %v1077_v2  ;;  %s900_s12 = sshll.u32 %s1253_s0, 4  ;;  %s901_s12 = int_to_ptr.vmem [resolvable:$true] %s900_s12 }
  0x52   :  { %971 = vmatprep.subr.bf16.mxu0 %v1241_v0  ;;  %s1203_s14 = scalar_lea.vmem %s901_s12, 256  ;;  %p1208_p5 = scmp.lt.s32.totalorder %s901_s12, %s901_s12 }
  0x53   :  { %p1204_p4 = scmp.ne.s32.totalorder %s901_s12, %s1203_s14  ;;  %p1209_p6 = scmp.lt.s32.totalorder %s1203_s14, %s1203_s14 }
  0x55   :  { %972 = vmatpush3.bf16.msra.mxu0 %v1078_v3  ;;  %p1210_p7 = por %p1209_p6, %p1208_p5 }
  0x56   :  { %973 = vmatprep.subr.bf16.mxu0 %v1241_v0 }
  0x57   :  { %p1211_p8 = pnand %p1210_p7, %p1204_p4 }
  0x59   :  { %974 = vmatpush3.bf16.msra.mxu0 %v1079_v4 }
  0x5a   :  { %975 = vmatprep.subr.bf16.mxu0 %v1241_v0 }
  0x5d   :  { %976 = vmatpush3.bf16.msra.mxu0 %v1080_v5 }
  0x5e   :  { %977 = vmatprep.subr.bf16.mxu0 %v1241_v0 }
  0x61   :  { %978 = vmatpush3.bf16.msra.mxu0 %v1081_v6 }
  0x62   :  { %1001 = vmatprep.subr.bf16.mxu0 %v1241_v0 }
  0x64   :  { %980 = vmatmul.mubr.msk.bf16.vlgmr.msra.gmra.mrb[0].mxu0 %vm142_vm1, %v1082_v7 }
  0x65   :  { %1003 = vmatprep.mubr.msk.bf16.mxu0 %vm1242_vm0, %v1241_v0 }
 0x137   :  { %v180_v9 = vpop.f32.mrb[0].mxu0 }
 0x138   :  { %v181_v10 = vadd.f32 %v914_v8, %v180_v9  ;;  %v981_v11 = vpop.f32.mrb[1].mxu0 }
 0x139   :  { %v183_v12 = vpop.f32.mrb[2].mxu0 }
 0x13a   :  { %v184_v13 = vadd.f32 %v914_v8, %v183_v12  ;;  %v982_v14 = vpop.f32.mrb[3].mxu0  ;;  %v187_v15 = vmul.f32 0.35355338, %v181_v10  ;;  %v441_v12 = vld [vmem:[#allocation8 + $0x4] sm:$0xf] }
 0x13c   :  { %v188_v16 = vmul.f32 0.35355338, %v184_v13  ;;  %v1373_v17 = vpack.c.bf16 %v184_v13, %v181_v10  ;;  %v447_v13 = vsel %vm445_vm4, %v441_v12, 0 }
 0x13e   :  { %v1375_v18 = vpack.c.bf16 %v188_v16, %v187_v15  ;;  %194 = vrot.lane.b32.xlu0 %v1373_v17, %s1243_s25 }
 0x1b0   :  { %v195_v19 = vpop.permute.xlu0 %194 }
 0x1b1   :  { %v201_v20 = vsel %vm196_vm2, %v195_v19, 0 }
 0x1b2   :  { %984 = vmatpush3.bf16.xpose.msra.mxu1 %v201_v20 }
 0x1b3   :  { %989 = vmatprep.subr.bf16.mxu1 %v1241_v0 }
 0x1b9   :  { %986 = vmatmul.mubr.msk.bf16.vlgmr.msra.gmra.mrb[0].mxu1 %vm196_vm2, %v1375_v18 }
 0x1ba   :  { %991 = vmatprep.mubr.msk.bf16.mxu1 %vm1242_vm0, %v1241_v0 }
 0x28c   :  { %v237_v22 = vpop.f32.mrb[0].mxu1 }
 0x28d   :  { %v238_v24 = vadd.f32 %v237_v22, %v1384_v21  ;;  %v987_v25 = vpop.f32.mrb[1].mxu1  ;;  %v316_v22 = vld [vmem:[#allocation8] sm:$0xf] }
 0x28e   :  { %v240_v26 = vpop.f32.mrb[2].mxu1 }
 0x28f   :  { %v241_v27 = vadd.f32 %v240_v26, %v1386_v23  ;;  %v988_v28 = vpop.f32.mrb[3].mxu1  ;;  %v245_v29 = vsel %vm244_vm3, %v238_v24, -inf }
 0x290   :  { %246 = vmax.xlane.f32.xlu0 %v245_v29 }
 0x291   :  { %v248_v30 = vsel %vm244_vm3, %v241_v27, -inf }
 0x292   :  { %249 = vmax.xlane.f32.xlu1 %v248_v30 }
 0x2a3   :  { %268 = vrot.lane.b32.xlu1 %v1373_v17, %s1237_s1  ;;  %s1245_s1 = smov 120  }
 0x31d   :  { %v247_v31 = vpop.xlane.xlu0 %246 }
 0x31e   :  { %v251_v32 = vsub.f32 %v238_v24, %v247_v31 }
 0x31f   :  { %v250_v33 = vpop.xlane.xlu1 %249 }
 0x320   :  { %v253_v34 = vmul.f32 1.442695, %v251_v32  ;;  %v252_v35 = vsub.f32 %v241_v27, %v250_v33  ;;  %v494_v27 = vsel %vm445_vm4, %v316_v22, 0 }
 0x322   :  { %1083 = vpow2.f32 %v253_v34  ;;  %v255_v36 = vmul.f32 1.442695, %v252_v35 }
 0x323   :  { %v269_v37 = vpop.permute.xlu1 %268 }
 0x324   :  { %1085 = vpow2.f32 %v255_v36  ;;  %990 = vmatpush3.bf16.msra.mxu1 %v269_v37 }
 0x325   :  { %995 = vmatprep.subr.bf16.mxu1 %v1241_v0 }
 0x32c   :  { %v1084_v38 = vpop.eup %1083 }
 0x32d   :  { %v257_v39 = vsel %vm244_vm3, %v1084_v38, 0.0 }
 0x32e   :  { %v1086_v40 = vpop.eup %1085  ;;  %258 = vadd.xlane.f32.xlu1 %v257_v39 }
 0x32f   :  { %v260_v41 = vsel %vm244_vm3, %v1086_v40, 0.0 }
 0x332   :  { %261 = vadd.xlane.f32.xlu1 %v260_v41 }
 0x343   :  { %320 = vrot.lane.b32.xlu1 %v1373_v17, %s1244_s3 }
 0x347   :  { %318 = vrot.lane.b32.xlu1 %v1375_v18, %s1245_s1 }
 0x3bb   :  { %v259_v42 = vpop.xlane.xlu1 %258 }
 0x3bc   :  { %1087 = vrcp.f32 %v259_v42 }
 0x3bf   :  { %v262_v43 = vpop.xlane.xlu1 %261 }
 0x3c0   :  { %1089 = vrcp.f32 %v262_v43 }
 0x3c3   :  { %v321_v48 = vpop.permute.xlu1 %320 }
 0x3c4   :  { %v326_v50 = vsel %vm196_vm2, %v321_v48, 0 }
 0x3c6   :  { %v1088_v44 = vpop.eup %1087 }
 0x3c7   :  { %v265_v46 = vmul.f32 %v1088_v44, %v1084_v38  ;;  %v319_v51 = vpop.permute.xlu1 %318 }
 0x3ca   :  { %v1090_v45 = vpop.eup %1089 }
 0x3cb   :  { %v266_v47 = vmul.f32 %v1090_v45, %v1086_v40 }
 0x3cd   :  { %v267_v49 = vpack.c.bf16 %v266_v47, %v265_v46 }
 0x3cf   :  { %992 = vmatmul.mubr.msk.bf16.vlgmr.msra.gmra.mrb[4].mxu1 %vm244_vm3, %v267_v49 }
 0x3d0   :  { %996 = vmatpush3.bf16.xpose.msra.mxu1 %v326_v50  ;;  %997 = vmatprep.mubr.msk.bf16.mxu1 %vm1242_vm0, %v1241_v0 }
 0x3d1   :  { %1007 = vmatprep.subr.bf16.mxu1 %v1241_v0 }
 0x3d7   :  { %998 = vmatmul.mubr.msk.bf16.vlgmr.msra.gmra.mrb[8].mxu1 %vm196_vm2, %v319_v51 }
 0x3d8   :  { %1009 = vmatprep.mubr.msk.bf16.mxu1 %vm1242_vm0, %v1241_v0  ;;  %1008 = vmatpush3.bf16.msra.mxu1 %v447_v13 }
 0x3d9   :  { %1019 = vmatprep.subr.bf16.mxu1 %v1241_v0 }
 0x4a2   :  { %v308_v52 = vpop.f32.mrb[4].mxu1 }
 0x4a3   :  { %v993_v53 = vpop.f32.mrb[5].mxu1 }
 0x4a4   :  { %v311_v54 = vpop.f32.mrb[6].mxu1 }
 0x4a5   :  { %v315_v55 = vpack.c.bf16 %v311_v54, %v308_v52  ;;  %v994_v56 = vpop.f32.mrb[7].mxu1 }
 0x4aa   :  { %v362_v57 = vpop.f32.mrb[8].mxu1 }
 0x4ab   :  { %v363_v58 = vadd.f32 %v362_v57, %v1384_v21  ;;  %v999_v59 = vpop.f32.mrb[9].mxu1 }
 0x4ac   :  { %v365_v60 = vpop.f32.mrb[10].mxu1 }
 0x4ad   :  { %v366_v61 = vadd.f32 %v365_v60, %v1386_v23  ;;  %v1000_v62 = vpop.f32.mrb[11].mxu1  ;;  %v369_v63 = vsel %vm244_vm3, %v363_v58, -inf }
 0x4ae   :  { %370 = vmax.xlane.f32.xlu0 %v369_v63 }
 0x4af   :  { %v372_v1 = vsel %vm244_vm3, %v366_v61, -inf }
 0x4b0   :  { %373 = vmax.xlane.f32.xlu1 %v372_v1 }
 0x53b   :  { %v371_v2 = vpop.xlane.xlu0 %370 }
 0x53c   :  { %v375_v3 = vsub.f32 %v363_v58, %v371_v2 }
 0x53d   :  { %v374_v4 = vpop.xlane.xlu1 %373 }
 0x53e   :  { %v377_v5 = vmul.f32 1.442695, %v375_v3  ;;  %v376_v6 = vsub.f32 %v366_v61, %v374_v4 }
 0x540   :  { %1091 = vpow2.f32 %v377_v5  ;;  %v379_v7 = vmul.f32 1.442695, %v376_v6 }
 0x542   :  { %1093 = vpow2.f32 %v379_v7 }
 0x54a   :  { %v1092_v8 = vpop.eup %1091 }
 0x54b   :  { %v381_v9 = vsel %vm244_vm3, %v1092_v8, 0.0 }
 0x54c   :  { %v1094_v10 = vpop.eup %1093  ;;  %382 = vadd.xlane.f32.xlu0 %v381_v9 }
 0x54d   :  { %v384_v11 = vsel %vm244_vm3, %v1094_v10, 0.0 }
 0x550   :  { %385 = vadd.xlane.f32.xlu0 %v384_v11  ;;  %v660_v11 = vld [vmem:[#allocation8 + $0x8] sm:$0xf] }
 0x551   :  { %v665_v12 = vsel %vm445_vm4, %v660_v11, 0 }
 0x566   :  { %392 = vrot.lane.b32.xlu0 %v1373_v17, %s1246_s26 }
 0x56a   :  { %539 = vrot.lane.b32.xlu0 %v1373_v17, %s1247_s27 }
 0x56e   :  { %537 = vrot.lane.b32.xlu0 %v1375_v18, %s1248_s28 }
 0x5d9   :  { %v383_v14 = vpop.xlane.xlu0 %382 }
 0x5da   :  { %1095 = vrcp.f32 %v383_v14 }
 0x5dd   :  { %v386_v15 = vpop.xlane.xlu0 %385 }
 0x5de   :  { %1097 = vrcp.f32 %v386_v15 }
 0x5e1   :  { %v393_v16 = vpop.permute.xlu0 %392 }
 0x5e2   :  { %1002 = vmatpush3.bf16.msra.mxu0 %v393_v16 }
 0x5e3   :  { %1013 = vmatprep.subr.bf16.mxu0 %v1241_v0 }
 0x5e4   :  { %v1096_v19 = vpop.eup %1095 }
 0x5e5   :  { %v389_v24 = vmul.f32 %v1096_v19, %v1092_v8  ;;  %v540_v30 = vpop.permute.xlu0 %539 }
 0x5e6   :  { %v545_v34 = vsel %vm196_vm2, %v540_v30, 0 }
 0x5e8   :  { %v1098_v20 = vpop.eup %1097 }
 0x5e9   :  { %v390_v25 = vmul.f32 %v1098_v20, %v1094_v10  ;;  %v538_v39 = vpop.permute.xlu0 %537 }
 0x5eb   :  { %v391_v26 = vpack.c.bf16 %v390_v25, %v389_v24 }
 0x5ed   :  { %1004 = vmatmul.mubr.msk.bf16.vlgmr.msra.gmra.mrb[4].mxu0 %vm244_vm3, %v391_v26 }
 0x5ee   :  { %1014 = vmatpush3.bf16.msra.mxu0 %v494_v27  ;;  %1015 = vmatprep.mubr.msk.bf16.mxu0 %vm1242_vm0, %v1241_v0 }
 0x5ef   :  { %1025 = vmatprep.subr.bf16.mxu0 %v1241_v0 }
 0x5f5   :  { %1016 = vmatmul.mubr.msk.bf16.vlgmr.msra.gmra.mrb[8].mxu0 %vm196_vm2, %v315_v55 }
 0x5f6   :  { %1027 = vmatprep.mubr.msk.bf16.mxu0 %vm1242_vm0, %v1241_v0 }
 0x6c0   :  { %v432_v28 = vpop.f32.mrb[4].mxu0 }
 0x6c1   :  { %v1005_v29 = vpop.f32.mrb[5].mxu0 }
 0x6c2   :  { %v435_v31 = vpop.f32.mrb[6].mxu0 }
 0x6c3   :  { %v439_v32 = vpack.c.bf16 %v435_v31, %v432_v28  ;;  %v1006_v33 = vpop.f32.mrb[7].mxu0 }
 0x6c5   :  { %1010 = vmatmul.mubr.msk.bf16.vlgmr.msra.gmra.mrb[12].mxu1 %vm196_vm2, %v439_v32 }
 0x6c6   :  { %1020 = vmatpush3.bf16.xpose.msra.mxu1 %v545_v34  ;;  %1021 = vmatprep.mubr.msk.bf16.mxu1 %vm1242_vm0, %v1241_v0 }
 0x6c7   :  { %1031 = vmatprep.subr.bf16.mxu1 %v1241_v0 }
 0x6c8   :  { %v530_v35 = vpop.f32.mrb[8].mxu0 }
 0x6c9   :  { %v1017_v36 = vpop.f32.mrb[9].mxu0 }
 0x6ca   :  { %v533_v37 = vpop.f32.mrb[10].mxu0 }
 0x6cb   :  { %v1018_v38 = vpop.f32.mrb[11].mxu0 }
 0x6cd   :  { %1022 = vmatmul.mubr.msk.bf16.vlgmr.msra.gmra.mrb[16].mxu1 %vm196_vm2, %v538_v39 }
 0x6ce   :  { %1033 = vmatprep.mubr.msk.bf16.mxu1 %vm1242_vm0, %v1241_v0  ;;  %1032 = vmatpush3.bf16.msra.mxu1 %v665_v12 }
 0x6cf   :  { %1043 = vmatprep.subr.bf16.mxu1 %v1241_v0 }
 0x798   :  { %v483_v40 = vpop.f32.mrb[12].mxu1 }
 0x799   :  { %v1435_v41 = vadd.f32 %v530_v35, %v483_v40  ;;  %v1011_v42 = vpop.f32.mrb[13].mxu1 }
 0x79a   :  { %v486_v43 = vpop.f32.mrb[14].mxu1 }
 0x79b   :  { %v1437_v44 = vadd.f32 %v533_v37, %v486_v43  ;;  %v1012_v45 = vpop.f32.mrb[15].mxu1  ;;  %v833_v37 = vld [vmem:[#allocation8 + $0xc] sm:$0xf] }
 0x79c   :  { %v838_v38 = vsel %vm445_vm4, %v833_v37, 0 }
 0x7a0   :  { %v581_v46 = vpop.f32.mrb[16].mxu1 }
 0x7a1   :  { %v582_v47 = vadd.f32 %v581_v46, %v1384_v21  ;;  %v1023_v48 = vpop.f32.mrb[17].mxu1 }
 0x7a2   :  { %v584_v49 = vpop.f32.mrb[18].mxu1 }
 0x7a3   :  { %v585_v50 = vadd.f32 %v584_v49, %v1386_v23  ;;  %v1024_v51 = vpop.f32.mrb[19].mxu1  ;;  %v588_v52 = vsel %vm244_vm3, %v582_v47, -inf }
 0x7a4   :  { %589 = vmax.xlane.f32.xlu1 %v588_v52 }
 0x7a5   :  { %v591_v53 = vsel %vm244_vm3, %v585_v50, -inf }
 0x7a6   :  { %592 = vmax.xlane.f32.xlu0 %v591_v53 }
 0x7b5   :  { %611 = vrot.lane.b32.xlu1 %v1373_v17, %s1249_s29 }
 0x831   :  { %v590_v54 = vpop.xlane.xlu1 %589 }
 0x832   :  { %v594_v55 = vsub.f32 %v582_v47, %v590_v54 }
 0x833   :  { %v593_v56 = vpop.xlane.xlu0 %592 }
 0x834   :  { %v596_v57 = vmul.f32 1.442695, %v594_v55  ;;  %v595_v58 = vsub.f32 %v585_v50, %v593_v56 }
 0x835   :  { %v612_v59 = vpop.permute.xlu1 %611 }
 0x836   :  { %1099 = vpow2.f32 %v596_v57  ;;  %v598_v60 = vmul.f32 1.442695, %v595_v58  ;;  %1026 = vmatpush3.bf16.msra.mxu0 %v612_v59  ;;  %v935_v58 = vld [vmem:[%s1497_s5] ss:$0 sm:$0xff] }
 0x837   :  { %1037 = vmatprep.subr.bf16.mxu0 %v1241_v0 }
 0x838   :  { %1101 = vpow2.f32 %v598_v60 }
 0x840   :  { %v1100_v61 = vpop.eup %1099 }
 0x841   :  { %v600_v62 = vsel %vm244_vm3, %v1100_v61, 0.0 }
 0x842   :  { %v1102_v63 = vpop.eup %1101  ;;  %601 = vadd.xlane.f32.xlu1 %v600_v62 }
 0x843   :  { %v603_v1 = vsel %vm244_vm3, %v1102_v63, 0.0 }
 0x846   :  { %604 = vadd.xlane.f32.xlu1 %v603_v1 }
 0x857   :  { %712 = vrot.lane.b32.xlu1 %v1373_v17, %s1250_s30 }
 0x85b   :  { %710 = vrot.lane.b32.xlu1 %v1375_v18, %s1251_s9 }
 0x8cf   :  { %v602_v2 = vpop.xlane.xlu1 %601 }
 0x8d0   :  { %1103 = vrcp.f32 %v602_v2 }
 0x8d3   :  { %v605_v3 = vpop.xlane.xlu1 %604 }
 0x8d4   :  { %1105 = vrcp.f32 %v605_v3 }
 0x8d7   :  { %v713_v8 = vpop.permute.xlu1 %712 }
 0x8d8   :  { %v718_v10 = vsel %vm196_vm2, %v713_v8, 0 }
 0x8da   :  { %v1104_v4 = vpop.eup %1103 }
 0x8db   :  { %v608_v6 = vmul.f32 %v1104_v4, %v1100_v61  ;;  %v711_v18 = vpop.permute.xlu1 %710 }
 0x8de   :  { %v1106_v5 = vpop.eup %1105 }
 0x8df   :  { %v609_v7 = vmul.f32 %v1106_v5, %v1102_v63 }
 0x8e1   :  { %v610_v9 = vpack.c.bf16 %v609_v7, %v608_v6 }
 0x8e3   :  { %1028 = vmatmul.mubr.msk.bf16.vlgmr.msra.gmra.mrb[12].mxu0 %vm244_vm3, %v610_v9 }
 0x8e4   :  { %1038 = vmatpush3.bf16.xpose.msra.mxu0 %v718_v10  ;;  %1039 = vmatprep.mubr.msk.bf16.mxu0 %vm1242_vm0, %v1241_v0 }
 0x8e5   :  { %1049 = vmatprep.subr.bf16.mxu0 %v1241_v0 }
 0x8eb   :  { %1040 = vmatmul.mubr.msk.bf16.vlgmr.msra.gmra.mrb[16].mxu0 %vm196_vm2, %v711_v18 }
 0x8ec   :  { %1051 = vmatprep.mubr.msk.bf16.mxu0 %vm1242_vm0, %v1241_v0  ;;  %1050 = vmatpush3.bf16.msra.mxu0 %v838_v38 }
 0x9b6   :  { %v651_v13 = vpop.f32.mrb[12].mxu0 }
 0x9b7   :  { %v1029_v14 = vpop.f32.mrb[13].mxu0 }
 0x9b8   :  { %v654_v15 = vpop.f32.mrb[14].mxu0 }
 0x9b9   :  { %v658_v16 = vpack.c.bf16 %v654_v15, %v651_v13  ;;  %v1030_v19 = vpop.f32.mrb[15].mxu0 }
 0x9bb   :  { %1034 = vmatmul.mubr.msk.bf16.vlgmr.msra.gmra.mrb[20].mxu1 %vm196_vm2, %v658_v16 }
 0x9bc   :  { %1045 = vmatprep.mubr.msk.bf16.mxu1 %vm1242_vm0, %v1241_v0 }
 0x9be   :  { %v754_v20 = vpop.f32.mrb[16].mxu0 }
 0x9bf   :  { %v755_v22 = vadd.f32 %v754_v20, %v1384_v21  ;;  %v1041_v24 = vpop.f32.mrb[17].mxu0 }
 0x9c0   :  { %v757_v25 = vpop.f32.mrb[18].mxu0 }
 0x9c1   :  { %v758_v26 = vadd.f32 %v757_v25, %v1386_v23  ;;  %v1042_v27 = vpop.f32.mrb[19].mxu0  ;;  %v761_v28 = vsel %vm244_vm3, %v755_v22, -inf }
 0x9c2   :  { %762 = vmax.xlane.f32.xlu0 %v761_v28 }
 0x9c3   :  { %v764_v29 = vsel %vm244_vm3, %v758_v26, -inf }
 0x9c4   :  { %765 = vmax.xlane.f32.xlu1 %v764_v29 }
 0xa4f   :  { %v763_v30 = vpop.xlane.xlu0 %762 }
 0xa50   :  { %v767_v31 = vsub.f32 %v755_v22, %v763_v30 }
 0xa51   :  { %v766_v32 = vpop.xlane.xlu1 %765 }
 0xa52   :  { %v769_v33 = vmul.f32 1.442695, %v767_v31  ;;  %v768_v34 = vsub.f32 %v758_v26, %v766_v32 }
 0xa54   :  { %1107 = vpow2.f32 %v769_v33  ;;  %v771_v0 = vmul.f32 1.442695, %v768_v34 }
 0xa56   :  { %1109 = vpow2.f32 %v771_v0 }
 0xa5e   :  { %v1108_v21 = vpop.eup %1107 }
 0xa5f   :  { %v773_v35 = vsel %vm244_vm3, %v1108_v21, 0.0 }
 0xa60   :  { %v1110_v36 = vpop.eup %1109  ;;  %774 = vadd.xlane.f32.xlu0 %v773_v35 }
 0xa61   :  { %v776_v23 = vsel %vm244_vm3, %v1110_v36, 0.0 }
 0xa64   :  { %777 = vadd.xlane.f32.xlu0 %v776_v23 }
 0xa7a   :  { %784 = vrot.lane.b32.xlu0 %v1373_v17, %s1252_s10 }
 0xa8e   :  { %v701_v39 = vpop.f32.mrb[20].mxu1 }
 0xa8f   :  { %v708_v40 = vadd.f32 %v701_v39, %v1435_v41  ;;  %v1035_v42 = vpop.f32.mrb[21].mxu1 }
 0xa90   :  { %v704_v43 = vpop.f32.mrb[22].mxu1 }
 0xa91   :  { %v709_v45 = vadd.f32 %v704_v43, %v1437_v44  ;;  %v1036_v46 = vpop.f32.mrb[23].mxu1 }
 0xaed   :  { %v775_v47 = vpop.xlane.xlu0 %774 }
 0xaee   :  { %1111 = vrcp.f32 %v775_v47 }
 0xaf1   :  { %v778_v48 = vpop.xlane.xlu0 %777 }
 0xaf2   :  { %1113 = vrcp.f32 %v778_v48 }
 0xaf5   :  { %v785_v49 = vpop.permute.xlu0 %784 }
 0xaf6   :  { %1044 = vmatpush3.bf16.msra.mxu1 %v785_v49 }
 0xaf8   :  { %v1112_v50 = vpop.eup %1111 }
 0xaf9   :  { %v781_v51 = vmul.f32 %v1112_v50, %v1108_v21 }
 0xafc   :  { %v1114_v17 = vpop.eup %1113 }
 0xafd   :  { %v782_v52 = vmul.f32 %v1114_v17, %v1110_v36 }
 0xaff   :  { %v783_v53 = vpack.c.bf16 %v782_v52, %v781_v51 }
 0xb01   :  { %1046 = vmatmul.mubr.msk.bf16.vlgmr.msra.gmra.mrb[24].mxu1 %vm244_vm3, %v783_v53 }
 0xbd4   :  { %v824_v54 = vpop.f32.mrb[24].mxu1 }
 0xbd5   :  { %v1047_v41 = vpop.f32.mrb[25].mxu1 }
 0xbd6   :  { %v827_v55 = vpop.f32.mrb[26].mxu1 }
 0xbd7   :  { %v831_v56 = vpack.c.bf16 %v827_v55, %v824_v54  ;;  %v1048_v57 = vpop.f32.mrb[27].mxu1 }
 0xbd9   :  { %1052 = vmatmul.mubr.msk.bf16.vlgmr.msra.gmra.mrb[20].mxu0 %vm196_vm2, %v831_v56 }
 0xcac   :  { %v874_v44 = vpop.f32.mrb[20].mxu0 }
 0xcad   :  { %v881_v59 = vadd.f32 %v874_v44, %v708_v40  ;;  %v1053_v60 = vpop.f32.mrb[21].mxu0 }
 0xcae   :  { %v877_v61 = vpop.f32.mrb[22].mxu0 }
 0xcaf   :  { %v890_v62 = vadd.f32 %v935_v58, %v881_v59  ;;  %v882_v63 = vadd.f32 %v877_v61, %v709_v45  ;;  %v1054_v1 = vpop.f32.mrb[23].mxu0 }
 0xcb1   :  { %v891_v2 = vadd.f32 %v935_v58, %v882_v63  ;;  %893 = vst.msk [vmem:[#allocation10] sm:$0xff] %vm892_vm5, %v890_v62 }
 0xcb3   :  { %894 = vst.msk [vmem:[#allocation10 + $0x8] sm:$0xff] %vm892_vm5, %v891_v2 }
 0xcb4   :  { %1214 = shalt.err (!%p1211_p8)
}
 0xcb5   :  { %s1215_s16 = scalar_lea.hbm %s1498_s6, 256 }
 0xcb6   :  { %p1216_p9 = scmp.ne.s32.totalorder %s1498_s6, %s1215_s16  ;;  %p1219_p10 = scmp.lt.u32.totalorder %s1215_s16, %s1498_s6 }
 0xcb8   :  { %p1221_p11 = pnand %p1219_p10, %p1216_p9 }
 0xcba   :  { %1224 = shalt.err (!%p1221_p11)
}
 0xcbb   :  { %906 = dma.vmem_to_hbm [thread:$0]  %s901_s12, 256, %s1498_s6, [#allocation4], %s1234_s7, %s1234_s7, %s1235_s8  }
 0xcbc   :  { %1231 = dma.done.wait [#allocation4], 256  }
 0xcbd   :  { %1232 = vsyncadd [#allocation4], 4294967040 }
 0xcbe   :  { %910 = vsyncpa [#allocation3], 1 }
 0xcbf   :  { %911 = vsyncpa [#allocation6], 1 }
 0xcc0   :  { %912 = vsyncpa [#allocation9], 1 }
 0xcc1   :  { %913 = vsyncpa [#allocation4], 1 }

</bundles_post_ra>
